<compile_context>
chip_gen: v7x
topology: tpu7x:2x2x1
jax: 0.10.0
libtpu: 0.0.40
codegen_flags: <defaults>
</compile_context>

<pallas_src>
import functools
import math

import jax
import jax.numpy as jnp
from jax.experimental import pallas as pl
from jax.experimental.pallas import tpu as pltpu

_VMEM_LIMIT_BYTES = 32 << 20   # explicit scoped-VMEM request: raises v5e's
                               # 16 MiB default, matches v6e/v7x defaults, and
                               # stays well under v7x's 64 MiB physical VMEM.


def onehot_kernel(idx_ref, out_ref, *, size, cardinality):
    """One block: idx (TB, size) int32 -> out (TB, size*cardinality).

    out[b, s*C + c] = 1  iff  idx[b, s] == c   (C = cardinality).
    Built directly on the flattened lane-dense layout: one dense store,
    no 3-D intermediate, no in-kernel reshape.
    """
    sc = size * cardinality
    # Column iota and its within-segment ("local") value: one (1, sc) row per
    # block, broadcast against all TB rows.
    pos = jax.lax.broadcasted_iota(jnp.int32, (1, sc), 1)             # (1, sc)

    if size > 8:
        # Many segments (the lane-folded path): replicate each index across
        # its C-wide segment on the idle MXU so the VPU does O(1) work per
        # output element (vs. O(size) compares of the old loop).
        local = pos % cardinality                                     # (1, sc)
        col = jax.lax.broadcasted_iota(jnp.int32, (size, sc), 1)
        seg_lo = jax.lax.broadcasted_iota(jnp.int32, (size, sc), 0) * cardinality
        # 0/1 expansion matrix E[s, j] = 1 iff column j lies in segment s.
        expand = ((col >= seg_lo) & (col < seg_lo + cardinality))
        expand = expand.astype(jnp.float32).astype(jnp.bfloat16)      # 0/1 exact
        idx = idx_ref[...]                                            # (TB, size)
        if cardinality <= 256:
            # Index values < 256 are exact in bf16, so the bf16 matmul with a
            # 0/1 matrix and f32 accumulation reproduces them exactly.
            idx_b = idx.astype(jnp.float32).astype(jnp.bfloat16)
            rep = jnp.dot(idx_b, expand, preferred_element_type=jnp.float32)
        else:
            # Split into bf16-exact halves (exact for cardinality <= 2**16).
            hi = (idx >> 8).astype(jnp.float32).astype(jnp.bfloat16)
            lo = (idx & 0xFF).astype(jnp.float32).astype(jnp.bfloat16)
            rep = (jnp.dot(hi, expand, preferred_element_type=jnp.float32) * 256.0
                   + jnp.dot(lo, expand, preferred_element_type=jnp.float32))
        # Segment-local compare: out-of-range / negative indices simply give an
        # all-zero segment (torch.index_select would raise; documented).
        out_ref[...] = (rep == local.astype(jnp.float32)).astype(out_ref.dtype)
    else:
        # Few segments (unfolded fallback, e.g. B has no usable fold): simple
        # compare/OR chain; ~3*size VPU ops per element is fine for size <= 8.
        idx = idx_ref[...]
        hot = jnp.zeros(out_ref.shape, dtype=jnp.bool_)
        for s in range(size):                                         # static unroll
            colv = idx[:, s:s + 1]                                    # (TB, 1)
            valid = (colv >= 0) & (colv < cardinality)
            hot = hot | ((pos == (colv + s * cardinality)) & valid)
        out_ref[...] = hot.astype(out_ref.dtype)


def _choose_fold(batch_rows, sc, *, min_lanes=512, max_lanes=4096):
    """Rows folded per kernel row so the output row is lane-dense.

    Picks the smallest k with (k*sc) % 128 == 0, k | batch_rows and
    k*sc >= min_lanes (keeping k small maximizes the grid length for
    megacore); falls back to the largest 128-aligned k below min_lanes,
    or 1 (no fold) if nothing divides batch_rows.
    """
    k0 = 128 // math.gcd(sc, 128)
    best = 0
    k = k0
    while k * sc <= max_lanes and k <= batch_rows:
        if batch_rows % k == 0:
            best = k
            if k * sc >= min_lanes:
                break
        k += k0
    return max(best, 1)


def _pick_block_rows(n_rows, in_cols, out_cols, out_itemsize,
                     *, vmem_budget_bytes=16 << 20):
    """Rows per grid step.

    Budgets the *padded*, *double-buffered* VMEM footprint (int32 input block
    + output block), keeps rows a multiple of the sublane tile, and prefers at
    least 2 grid steps so both v7x TensorCores get work.
    """
    def lanes(c):
        return -(-c // 128) * 128

    per_row = 2 * (lanes(in_cols) * 4 + lanes(out_cols) * out_itemsize)
    row_mult = max(8, 32 // out_itemsize)          # 8 rows f32, 16 bf16, 32 int8
    rows = max(row_mult, (vmem_budget_bytes // per_row) // row_mult * row_mult)
    if n_rows >= 2 * row_mult:                     # keep grid length >= 2
        half = max(row_mult, ((n_rows + 1) // 2) // row_mult * row_mult)
        rows = min(rows, half)
    return min(rows, n_rows)


def one_hot_encoding_layer(batch, size, cardinality, *,
                           out_dtype=jnp.float32, block_rows=None):
    """Pallas equivalent of OneHotEncodingLayer.forward.

    batch: (B, size) integer coordinates in [0, cardinality).
    returns: (B, size*cardinality) concatenated one-hots (float32 by default to
    match torch.eye; pass out_dtype=jnp.bfloat16 to halve HBM store traffic of
    this write-bound op when the consumer allows it).
    """
    B = batch.shape[0]
    assert batch.shape == (B, size)
    if batch.dtype != jnp.int32:
        batch = batch.astype(jnp.int32)
    out_dtype = jnp.dtype(out_dtype)
    sc = size * cardinality

    # Lane folding: fold k batch rows into one kernel row so the kernel output
    # last dim is a multiple of 128 (>= 512 lanes).  Both reshapes are free
    # row-major metadata ops; the folded output row is exactly the k original
    # output rows concatenated.
    k = _choose_fold(B, sc)
    fB, fsize, fsc = B // k, k * size, k * sc
    fbatch = batch.reshape(fB, fsize)

    if block_rows is None:
        block_rows = _pick_block_rows(fB, fsize, fsc, out_dtype.itemsize)
    block_rows = min(block_rows, fB)

    kernel = functools.partial(onehot_kernel, size=fsize, cardinality=cardinality)
    out = pl.pallas_call(
        kernel,
        out_shape=jax.ShapeDtypeStruct((fB, fsc), out_dtype),
        grid=(pl.cdiv(fB, block_rows),),
        in_specs=[pl.BlockSpec((block_rows, fsize), lambda i: (i, 0))],
        out_specs=pl.BlockSpec((block_rows, fsc), lambda i: (i, 0)),
        compiler_params=pltpu.CompilerParams(
            dimension_semantics=("parallel",),
            vmem_limit_bytes=_VMEM_LIMIT_BYTES),
    )(fbatch)
    return out.reshape(B, sc)


def _reference(batch, size, cardinality):
    # Pure-JAX reference: index_select on eye == one_hot, then flatten per row.
    lookup = jnp.eye(cardinality, dtype=jnp.float32)
    return lookup[batch.reshape(-1)].reshape(batch.shape[0], size * cardinality)


if __name__ == "__main__":
    SIZE, CARD = 2, 16                     # pairs of coordinates in [0, 16)

    # 1) Main lane-folded path (fold k=16 -> 512-lane rows, grid of 2 blocks).
    B = 256
    batch = jax.random.randint(jax.random.PRNGKey(0), (B, SIZE),
                               minval=0, maxval=CARD, dtype=jnp.int32)
    out = jax.block_until_ready(one_hot_encoding_layer(batch, SIZE, CARD))
    ref = _reference(batch, SIZE, CARD)
    assert out.shape == (B, SIZE * CARD)
    assert out.dtype == jnp.float32
    assert jnp.array_equal(out, ref)

    # 2) Folded + explicit small blocks: 3 grid steps with a partial last block.
    B2 = 320
    batch2 = jax.random.randint(jax.random.PRNGKey(1), (B2, SIZE),
                                minval=0, maxval=CARD, dtype=jnp.int32)
    out2 = jax.block_until_ready(
        one_hot_encoding_layer(batch2, SIZE, CARD, block_rows=8))
    ref2 = _reference(batch2, SIZE, CARD)
    assert out2.shape == (B2, SIZE * CARD)
    assert jnp.array_equal(out2, ref2)

    # 3) Fallback path: B has no usable fold -> unfolded compare/OR kernel.
    B3 = 10
    batch3 = jax.random.randint(jax.random.PRNGKey(2), (B3, SIZE),
                                minval=0, maxval=CARD, dtype=jnp.int32)
    out3 = jax.block_until_ready(one_hot_encoding_layer(batch3, SIZE, CARD))
    ref3 = _reference(batch3, SIZE, CARD)
    assert out3.shape == (B3, SIZE * CARD)
    assert jnp.array_equal(out3, ref3)

    # 4) bf16 output option (values are exactly 0/1, so still exact).
    out_bf16 = jax.block_until_ready(
        one_hot_encoding_layer(batch, SIZE, CARD, out_dtype=jnp.bfloat16))
    assert out_bf16.dtype == jnp.bfloat16
    assert jnp.array_equal(out_bf16.astype(jnp.float32), ref)

    print("KERNEL_OK")
</pallas_src>

<mosaic_0001>
module attributes {stable_mosaic.version = 11 : i64} {
  func.func @onehot_kernel(%arg0: i32, %arg1: memref<8x32xi32, #tpu.memory_space<vmem>>, %arg2: memref<8x512xf32, #tpu.memory_space<vmem>>) attributes {dimension_semantics = [#tpu.dimension_semantics<parallel>], iteration_bounds = array<i64: 2>, scalar_prefetch = 0 : i64, scratch_operands = 0 : i64, tpu.core_type = #tpu.core_type<tc>, window_params = [{transform_indices = @transform_0, window_bounds = array<i64: 8, 32>}, {transform_indices = @transform_1, window_bounds = array<i64: 8, 512>}]} {
    %0 = tpu.iota {dimensions = array<i32: 1>} : vector<1x512xi32>
    %c16_i32 = arith.constant 16 : i32
    %c0_i32 = arith.constant 0 : i32
    %1 = arith.cmpi eq, %c16_i32, %c0_i32 : i32
    %c1_i32 = arith.constant 1 : i32
    %2 = arith.select %1, %c1_i32, %c16_i32 : i32
    %3 = vector.broadcast %2 : i32 to vector<1x512xi32>
    %4 = arith.remsi %0, %3 : vector<1x512xi32>
    %c0_i32_0 = arith.constant 0 : i32
    %5 = vector.broadcast %c0_i32_0 : i32 to vector<1x512xi32>
    %6 = arith.cmpi ne, %4, %5 : vector<1x512xi32>
    %c0_i32_1 = arith.constant 0 : i32
    %7 = vector.broadcast %c0_i32_1 : i32 to vector<1x512xi32>
    %8 = arith.cmpi slt, %4, %7 : vector<1x512xi32>
    %c0_i32_2 = arith.constant 0 : i32
    %9 = arith.cmpi slt, %2, %c0_i32_2 : i32
    %10 = vector.broadcast %9 : i1 to vector<1x512xi1>
    %11 = vector.broadcast %10 : vector<1x512xi1> to vector<1x512xi1>
    %12 = arith.xori %8, %11 : vector<1x512xi1>
    %13 = arith.andi %12, %6 : vector<1x512xi1>
    %14 = vector.broadcast %2 : i32 to vector<1x512xi32>
    %15 = arith.addi %4, %14 : vector<1x512xi32>
    %16 = arith.select %13, %15, %4 : vector<1x512xi1>, vector<1x512xi32>
    %17 = tpu.iota {dimensions = array<i32: 1>} : vector<32x512xi32>
    %18 = tpu.iota {dimensions = array<i32: 0>} : vector<32x512xi32>
    %c16_i32_3 = arith.constant 16 : i32
    %19 = vector.broadcast %c16_i32_3 : i32 to vector<32x512xi32>
    %20 = arith.muli %18, %19 : vector<32x512xi32>
    %21 = arith.cmpi sge, %17, %20 : vector<32x512xi32>
    %c16_i32_4 = arith.constant 16 : i32
    %22 = vector.broadcast %c16_i32_4 : i32 to vector<32x512xi32>
    %23 = arith.addi %20, %22 : vector<32x512xi32>
    %24 = arith.cmpi slt, %17, %23 : vector<32x512xi32>
    %25 = arith.andi %21, %24 : vector<32x512xi1>
    %26 = arith.extui %25 : vector<32x512xi1> to vector<32x512xi32>
    %27 = arith.sitofp %26 : vector<32x512xi32> to vector<32x512xf32>
    %28 = arith.truncf %27 : vector<32x512xf32> to vector<32x512xbf16>
    %c0 = arith.constant 0 : index
    %c0_5 = arith.constant 0 : index
    %29 = vector.load %arg1[%c0, %c0_5] : memref<8x32xi32, #tpu.memory_space<vmem>>, vector<8x32xi32>
    %30 = arith.sitofp %29 : vector<8x32xi32> to vector<8x32xf32>
    %31 = arith.truncf %30 : vector<8x32xf32> to vector<8x32xbf16>
    %cst = arith.constant dense<0.000000e+00> : vector<8x512xf32>
    %32 = tpu.matmul %31, %28, %cst {dimension_numbers = #tpu.dot_dimension_numbers<[1], [0], [0], [1], [0, 0, 1, 1], [], []>} : vector<8x32xbf16>, vector<32x512xbf16>, vector<8x512xf32> -> vector<8x512xf32>
    %33 = arith.sitofp %16 : vector<1x512xi32> to vector<1x512xf32>
    %34 = vector.broadcast %33 : vector<1x512xf32> to vector<8x512xf32>
    %35 = arith.cmpf oeq, %32, %34 : vector<8x512xf32>
    %36 = arith.extui %35 : vector<8x512xi1> to vector<8x512xi32>
    %37 = arith.sitofp %36 : vector<8x512xi32> to vector<8x512xf32>
    %c0_6 = arith.constant 0 : index
    %c0_7 = arith.constant 0 : index
    %38 = vector.load %arg2[%c0_6, %c0_7] : memref<8x512xf32, #tpu.memory_space<vmem>>, vector<8x512xf32>
    tpu.vector_store %arg2[%c0_6, %c0_7], %37 {strides = array<i32>} : memref<8x512xf32, #tpu.memory_space<vmem>>, vector<8x512xf32>,
    return
  }
  func.func @transform_0(%arg0: i32) -> (i32, i32) {
    %c0_i32 = arith.constant 0 : i32
    %c0_i32_0 = arith.constant 0 : i32
    return %arg0, %c0_i32 : i32, i32
  }
  func.func @transform_1(%arg0: i32) -> (i32, i32) {
    %c0_i32 = arith.constant 0 : i32
    %c0_i32_0 = arith.constant 0 : i32
    return %arg0, %c0_i32 : i32, i32
  }
}

</mosaic_0001>

<bundles_post_ra>
// kernel: tpu_custom_call.1
= control target key start
LH: loop header
LB: loop body
LE: loop exit
PB: predicated region body
PF: predicated region fallthrough
CT: control target
= control target key end

     0   :  { %6 = vsyncpa [#allocation3], 0  ;;  %s913_s0 = inlined_call_operand.hbm [shape: s32[16,32], index: 0, kind: input, shape index: {}]   ;;  %s914_s1 = inlined_call_operand.hbm [shape: f32[16,512], index: 1, kind: output, shape index: {}]  }
   0x1   :  { %8 = vsyncpa [#allocation3 + $0x1], 0 }
   0x2   :  { %9 = vsyncpa [#allocation4], 0 }
   0x3   :  { %11 = vsyncpa [#allocation4 + $0x1], 0  ;;  %s695_s6 = smov 0   ;;  %s697_s7 = smov 0  }
   0x4   :  { %s699_s8 = smov 0   ;;  %s701_s9 = smov 0  }
   0x5 LB: > { %s716_s10 = sadd.s32 4294967295, %s678_s9   ;;  %s481_s11 = sadd.s32 4294967294, %s678_s9   ;;  %s678_s9 = sphi %s701_s9, %s931_s9   ;;  %s674_s8 = sphi %s699_s8, %s930_s8   ;;  %s670_s7 = sphi %s697_s7, %s929_s7   ;;  %s666_s6 = sphi %s695_s6, %s928_s6  }
   0x6   : > { %s720_s12 = sadd.s32 1, %s678_s9   ;;  %s24_s13 = sadd.s32 1, %s674_s8 }
   0x7   : > { %s21_s14 = ssub.s32 %s678_s9, %s720_s12  ;;  %p31_p0 = scmp.ne.s32.totalorder %s674_s8, %s670_s7 }
   0x8   : > { %p22_p1 = scmp.eq.s32.totalorder %s21_s14, 0  ;;  %p32_p2 = scmp.eq.s32.totalorder %s678_s9, 0 }
   0x9   : > { %p37_p3 = scmp.ne.s32.totalorder %s670_s7, %s666_s6  ;;  %p38_p4 = scmp.eq.s32.totalorder %s716_s10, 0 }
   0xa   : > { %s732_s15 = scalar_select %p22_p1, %s674_s8, %s24_s13  }
   0xb   : > { %p734_p5 = por %p32_p2, %p31_p0  ;;  %p738_p6 = por %p38_p4, %p37_p3 }
   0xc   : > { %p61_p7 = scmp.eq.s32.totalorder %s716_s10, 1  ;;  %p67_p8 = scmp.eq.s32.totalorder %s481_s11, 1 }
   0xd   : > { %p545_p10 = scmp.lt.s32.totalorder %s678_s9, 2  ;;  %s87_s20 = sand.u32 1, %s674_s8  }
   0xe   : > { %p745_p11 = por %p61_p7, %p31_p0  ;;  %p749_p12 = por %p67_p8, %p37_p3 }
   0xf   : > { %s485_s21 = sshll.u32 %s678_s9, 7  ;;  %s484_s22 = sshll.u32 %s87_s20, 3 }
  0x10   : > { %s918_s18 = scalar_select %p745_p11, 1, 0 }
  0x11   : > { %s919_s19 = scalar_select %p749_p12, 1, 0 }
  0x12   : > { %s758_s25 = scalar_lea.hbm %s913_s0, %s485_s21  ;;  %s91_s26 = scalar_lea.vmem [#allocation2], %s484_s22 }
  0x13   : > { %s98_s27 = sshll.u32 %s91_s26, 4  ;;  %p762_p13 = pnand %p545_p10, %p734_p5  ;;  %s766_s27 = int_to_ptr.vmem [resolvable:$true] %s98_s27 }
  0x14   : > { %s88_s29 = scalar_lea.sflag [#allocation3], %s87_s20  ;;  %s582_s30 = scalar_lea.hbm %s758_s25, 128 }
  0x15   : > { %p583_p2 = scmp.ne.s32.totalorder %s758_s25, %s582_s30  ;;  %p584_p3 = pneg %p762_p13 }
  0x16   : > { %s587_s4 = scalar_lea.hbm %s913_s0, 256  ;;  %p588_p5 = scmp.lt.u32.totalorder %s758_s25, %s913_s0 }
  0x17   : > { %p585_p4 = pnand %p584_p3, %p583_p2  ;;  %p589_p8 = scmp.lt.u32.totalorder %s587_s4, %s582_s30 }
  0x18   : > { %p591_p9 = scmp.lt.u32.totalorder %s582_s30, %s758_s25 }
  0x19   : > { %p586_p7 = pneg %p585_p4  ;;  %p590_p10 = por %p589_p8, %p588_p5 }
  0x1b   : > { %p592_p0 = por %p591_p9, %p590_p10 }
  0x1d   : > { %p593_p1 = pnand %p592_p0, %p586_p7 }
  0x1f   : > { %596 = shalt.err (!%p593_p1)
}
  0x20   : > { %s597_s13 = scalar_lea.vmem %s766_s27, 128  ;;  %s680_s14 = smov [#allocation2]  }
  0x21   : > { %p598_p2 = scmp.ne.s32.totalorder %s766_s27, %s597_s13  ;;  %s602_s16 = sshll.u32 %s680_s14, 4  ;;  %s603_s16 = int_to_ptr.vmem [resolvable:$false] %s602_s16 }
  0x22   : > { %s604_s20 = scalar_lea.vmem %s603_s16, 256  ;;  %p605_p11 = scmp.lt.s32.totalorder %s766_s27, %s603_s16 }
  0x23   : > { %p600_p4 = pnand %p598_p2, %p584_p3  ;;  %p606_p5 = scmp.lt.s32.totalorder %s604_s20, %s597_s13 }
  0x25   : > { %p601_p12 = pneg %p600_p4  ;;  %p607_p8 = por %p606_p5, %p605_p11 }
  0x27   : > { %p608_p9 = pnand %p607_p8, %p601_p12 }
  0x29   : > { %611 = shalt.err (!%p608_p9)
}
  0x2a   : > { %540 = dma.hbm_to_vmem [thread:$0]  (!%p762_p13), %s758_s25, 128, %s766_s27, %s88_s29  }
  0x2b   : > { %p921_p0 = scmp.lt.s32.totalorder %s678_s9, 3  ;;  %p922_p1 = scmp.ge.s32.totalorder %s678_s9, 1 }
  0x2d   : > { %p104_p3 = pnand %p922_p1, %p921_p0 }
  0x2e   : > { %s800_s21 = sand.u32 (!%p104_p3), 1, %s670_s7  }
  0x2f   : > { %107 = sbr.rel (%p104_p3) target bundleno = 320 (0x140), region = 24  ;;  %s487_s22 = sshll.u32 (!%p104_p3), %s800_s21, 3 }
  0x30   : > { %s110_s23 = scalar_lea.sflag (!%p104_p3), [#allocation3], %s800_s21  ;;  %s804_s24 = scalar_lea.vmem (!%p104_p3), [#allocation2], %s487_s22 }
  0x36   : > { %657 = dma.done.wait (%p738_p6), %s110_s23, 128  }
  0x37   : > { %659 = vsyncadd (%p738_p6), %s110_s23, 4294967168  ;;  %v133_v0 = vlaneseq  ;;  %v681_v1 = vmov 0   ;;  %v682_v17 = vmov 1.0|1.0   ;;  %v287_v20 = vld [vmem:[%s804_s24] sm:$0xff]  ;;  %s488_s17 = sshll.u32 %s800_s21, 5 }
  0x38   : > { %326 = vmatprep.mubr.bf16.mxu0 %v681_v1  ;;  %367 = vmatprep.mubr.bf16.mxu1 %v681_v1  ;;  %v288_v21 = vcvt.s32.f32 %v287_v20  ;;  %v683_v33 = vmov 0.0   ;;  %s532_s25 = sshll.u32 %s716_s10, 9  ;;  %s131_s26 = scalar_lea.vmem [#allocation5], %s488_s17 }
  0x39   : > { %v810_v2 = vand.u32 127, %v133_v0  ;;  %v187_v3 = vshrl.u32 %v133_v0, 7  ;;  %s411_s27 = sshll.u32 %s131_s26, 4  ;;  %s869_s30 = scalar_lea.hbm %s914_s1, %s532_s25  ;;  %s871_s27 = int_to_ptr.vmem [resolvable:$true] %s411_s27 }
  0x3a   : > { %v289_v22 = vpack.c.bf16 %v288_v21, %v288_v21  ;;  %s397_s10 = scalar_lea.sflag [#allocation4], %s800_s21  ;;  %s612_s2 = scalar_lea.vmem %s871_s27, 512 }
  0x3b   : > { %v813_v4 = vadd.s32 128, %v810_v2  ;;  %v188_v5 = vadd.s32 8, %v187_v3  ;;  %v191_v6 = vmul.u32 16, %v187_v3  ;;  %v816_v7 = vadd.s32 384, %v810_v2  ;;  %p613_p6 = scmp.ne.s32.totalorder %s871_s27, %s612_s2  ;;  %p925_p11 = scmp.ne.s32.totalorder %s918_s18, 0 }
  0x3c   : > { %v189_v10 = vadd.s32 16, %v187_v3  ;;  %v190_v11 = vadd.s32 24, %v187_v3  ;;  %v831_v15 = vadd.s32 256, %v810_v2  ;;  %v142_v23 = vand.u32 15, %v810_v2  ;;  %s684_s3 = smov [#allocation5]  }
  0x3d   : > { %v192_v8 = vmul.u32 16, %v188_v5  ;;  %vm196_vm0 = vcmp.ge.s32.totalorder %v813_v4, %v191_v6  ;;  %v211_v9 = vadd.s32 16, %v191_v6  ;;  %vm198_vm1 = vcmp.ge.s32.totalorder %v816_v7, %v191_v6  ;;  %p614_p12 = pnand %p613_p6, %p925_p11  ;;  %s616_s4 = sshll.u32 %s684_s3, 4  ;;  %s617_s4 = int_to_ptr.vmem [resolvable:$false] %s616_s4 }
  0x3e   : > { %v193_v14 = vmul.u32 16, %v189_v10  ;;  %v194_v16 = vmul.u32 16, %v190_v11  ;;  %vm195_vm12 = vcmp.ge.s32.totalorder %v810_v2, %v191_v6  ;;  %v149_v24 = vand.u32 15, %v813_v4  ;;  %s618_s5 = scalar_lea.vmem %s617_s4, 1024  ;;  %p619_p7 = scmp.lt.s32.totalorder %s871_s27, %s617_s4 }
  0x3f   : > { %vm200_vm2 = vcmp.ge.s32.totalorder %v813_v4, %v192_v8  ;;  %v212_v12 = vadd.s32 16, %v192_v8  ;;  %vm216_vm3 = vcmp.lt.s32.totalorder %v813_v4, %v211_v9  ;;  %vm218_vm5 = vcmp.lt.s32.totalorder %v816_v7, %v211_v9  ;;  %p615_p13 = pneg %p614_p12  ;;  %p620_p10 = scmp.lt.s32.totalorder %s618_s5, %s612_s2 }
  0x40   : > { %vm232_vm4 = vmand %vm196_vm0, %vm216_vm3  ;;  %vm202_vm7 = vcmp.ge.s32.totalorder %v816_v7, %v192_v8  ;;  %vm215_vm13 = vcmp.lt.s32.totalorder %v810_v2, %v211_v9  ;;  %vm199_vm15 = vcmp.ge.s32.totalorder %v810_v2, %v192_v8  ;;  %v213_v18 = vadd.s32 16, %v193_v14 }
  0x41   : > { %vm220_vm6 = vcmp.lt.s32.totalorder %v813_v4, %v212_v12  ;;  %vm222_vm8 = vcmp.lt.s32.totalorder %v816_v7, %v212_v12  ;;  %vm826_vm9 = vmand %vm198_vm1, %vm218_vm5  ;;  %vm219_vm0 = vcmp.lt.s32.totalorder %v810_v2, %v212_v12  ;;  %vm197_vm3 = vcmp.ge.s32.totalorder %v831_v15, %v191_v6  ;;  %p621_p2 = por %p620_p10, %p619_p7 }
  0x42   : > { %vm236_vm10 = vmand %vm200_vm2, %vm220_vm6  ;;  %v214_v19 = vadd.s32 16, %v194_v16  ;;  %vm201_vm6 = vcmp.ge.s32.totalorder %v831_v15, %v192_v8  ;;  %v156_v25 = vand.u32 15, %v831_v15  ;;  %v376_v26 = vcvt.s32.f32 %v142_v23 }
  0x43   : > { %vm505_vm11 = vmpackc.low %vm236_vm10, %vm232_vm4  ;;  %vm217_vm4 = vcmp.lt.s32.totalorder %v831_v15, %v211_v9  ;;  %v163_v27 = vand.u32 15, %v816_v7  ;;  %v377_v28 = vcvt.s32.f32 %v149_v24  ;;  %p622_p4 = pnand %p621_p2, %p615_p13 }
  0x44   : > { %506 = vmatprep.subr.msk.bf16.mxu0 %vm505_vm11, %v682_v17  ;;  %vm238_vm14 = vmand %vm202_vm7, %vm222_vm8  ;;  %vm221_vm7 = vcmp.lt.s32.totalorder %v831_v15, %v212_v12  ;;  %vm204_vm11 = vcmp.ge.s32.totalorder %v813_v4, %v193_v14  ;;  %v378_v30 = vcvt.s32.f32 %v156_v25 }
  0x45   : > { %vm514_vm1 = vmpackc.low %vm238_vm14, %vm826_vm9  ;;  %vm224_vm9 = vcmp.lt.s32.totalorder %v813_v4, %v213_v18  ;;  %v379_v32 = vcvt.s32.f32 %v163_v27 }
  0x46   : > { %515 = vmatprep.subr.msk.bf16.mxu1 %vm514_vm1, %v682_v17  ;;  %vm231_vm2 = vmand %vm195_vm12, %vm215_vm13  ;;  %vm208_vm12 = vcmp.ge.s32.totalorder %v813_v4, %v194_v16  ;;  %vm228_vm13 = vcmp.lt.s32.totalorder %v813_v4, %v214_v19 }
  0x47   : > { %vm235_vm5 = vmand %vm199_vm15, %vm219_vm0  ;;  %vm206_vm0 = vcmp.ge.s32.totalorder %v816_v7, %v193_v14 }
  0x48   : > { %vm507_vm8 = vmpackc.low %vm235_vm5, %vm231_vm2  ;;  %vm226_vm2 = vcmp.lt.s32.totalorder %v816_v7, %v213_v18 }
  0x49   : > { %508 = vmatpush1.bf16.msk.msra.mxu0 %vm507_vm8, %v682_v17  ;;  %vm233_vm10 = vmand %vm197_vm3, %vm217_vm4  ;;  %vm210_vm8 = vcmp.ge.s32.totalorder %v816_v7, %v194_v16  ;;  %vm230_vm3 = vcmp.lt.s32.totalorder %v816_v7, %v214_v19 }
  0x4a   : > { %vm237_vm14 = vmand %vm201_vm6, %vm221_vm7  ;;  %vm203_vm7 = vcmp.ge.s32.totalorder %v810_v2, %v193_v14 }
  0x4b   : > { %vm516_vm1 = vmpackc.low %vm237_vm14, %vm233_vm10  ;;  %vm223_vm10 = vcmp.lt.s32.totalorder %v810_v2, %v213_v18 }
  0x4c   : > { %517 = vmatpush1.bf16.msk.msra.mxu1 %vm516_vm1, %v682_v17  ;;  %vm240_vm15 = vmand %vm204_vm11, %vm224_vm9  ;;  %vm207_vm11 = vcmp.ge.s32.totalorder %v810_v2, %v194_v16  ;;  %vm227_vm9 = vcmp.lt.s32.totalorder %v810_v2, %v214_v19 }
  0x4d   : > { %vm244_vm5 = vmand %vm208_vm12, %vm228_vm13  ;;  %vm205_vm13 = vcmp.ge.s32.totalorder %v831_v15, %v193_v14 }
  0x4e   : > { %vm509_vm4 = vmpackc.low %vm244_vm5, %vm240_vm15  ;;  %vm225_vm5 = vcmp.lt.s32.totalorder %v831_v15, %v213_v18 }
  0x4f   : > { %510 = vmatprep.subr.msk.bf16.mxu0 %vm509_vm4, %v682_v17  ;;  %vm242_vm6 = vmand %vm206_vm0, %vm226_vm2  ;;  %vm209_vm0 = vcmp.ge.s32.totalorder %v831_v15, %v194_v16  ;;  %vm229_vm2 = vcmp.lt.s32.totalorder %v831_v15, %v214_v19 }
  0x50   : > { %vm246_vm14 = vmand %vm210_vm8, %vm230_vm3  ;;  %vm290_vm3 = vcmask 261120  }
  0x51   : > { %vm518_vm1 = vmpackc.low %vm246_vm14, %vm242_vm6 }
  0x52   : > { %519 = vmatprep.subr.msk.bf16.mxu1 %vm518_vm1, %v682_v17  ;;  %vm239_vm12 = vmand %vm203_vm7, %vm223_vm10 }
  0x53   : > { %vm243_vm15 = vmand %vm207_vm11, %vm227_vm9 }
  0x54   : > { %vm511_vm4 = vmpackc.low %vm243_vm15, %vm239_vm12 }
  0x55   : > { %512 = vmatpush1.bf16.msk.msra.mxu0 %vm511_vm4, %v682_v17  ;;  %vm241_vm8 = vmand %vm205_vm13, %vm225_vm5 }
  0x56   : > { %vm245_vm6 = vmand %vm209_vm0, %vm229_vm2 }
  0x57   : > { %vm520_vm14 = vmpackc.low %vm245_vm6, %vm241_vm8 }
  0x58   : > { %521 = vmatpush1.bf16.msk.msra.mxu1 %vm520_vm14, %v682_v17  ;;  %513 = vmatmul.mubr.msk.bf16.vlgmr.msra.gmra.mrb[0].mxu0 %vm290_vm3, %v289_v22 }
  0x5b   : > { %522 = vmatmul.mubr.msk.bf16.vlgmr.msra.gmra.mrb[0].mxu1 %vm290_vm3, %v289_v22 }
 0x12b   : > { %v328_v29 = vpop.f32.mrb[0].mxu0 }
 0x12c   : > { %vm380_vm7 = vcmp.eq.f32.partialorder %v328_v29, %v376_v26  ;;  %v330_v31 = vpop.f32.mrb[1].mxu0 }
 0x12d   : > { %v523_v34 = vsel %vm380_vm7, 1.0, %v683_v33  ;;  %vm381_vm10 = vcmp.eq.f32.partialorder %v330_v31, %v377_v28  ;;  %v332_v35 = vpop.f32.mrb[2].mxu0 }
 0x12e   : > { %392 = vst [vmem:[%s131_s26] sm:$0xff] %v523_v34  ;;  %v369_v36 = vpop.f32.mrb[0].mxu1  ;;  %v524_v37 = vsel %vm381_vm10, 1.0, %v683_v33  ;;  %v333_v38 = vpop.f32.mrb[3].mxu0 }
 0x12f   : > { %vm382_vm11 = vcmp.eq.f32.partialorder %v369_v36, %v378_v30  ;;  %393 = vst [vmem:[%s131_s26 + $0x8] sm:$0xff] %v524_v37  ;;  %v371_v39 = vpop.f32.mrb[1].mxu1 }
 0x130   : > { %v525_v40 = vsel %vm382_vm11, 1.0, %v683_v33  ;;  %vm383_vm9 = vcmp.eq.f32.partialorder %v371_v39, %v379_v32  ;;  %v373_v41 = vpop.f32.mrb[2].mxu1 }
 0x131   : > { %394 = vst [vmem:[%s131_s26 + $0x10] sm:$0xff] %v525_v40  ;;  %v526_v42 = vsel %vm383_vm9, 1.0, %v683_v33  ;;  %v374_v43 = vpop.f32.mrb[3].mxu1 }
 0x132   : > { %395 = vst [vmem:[%s131_s26 + $0x18] sm:$0xff] %v526_v42 }
 0x133   : > { %625 = shalt.err (!%p622_p4)
}
 0x134   : > { %s626_s11 = scalar_lea.hbm %s869_s30, 512  ;;  %s630_s16 = scalar_lea.hbm %s914_s1, 1024 }
 0x135   : > { %p627_p5 = scmp.ne.s32.totalorder %s869_s30, %s626_s11  ;;  %p631_p0 = scmp.lt.u32.totalorder %s869_s30, %s914_s1 }
 0x136   : > { %p632_p1 = scmp.lt.u32.totalorder %s630_s16, %s626_s11  ;;  %p634_p6 = scmp.lt.u32.totalorder %s626_s11, %s869_s30 }
 0x137   : > { %p628_p8 = pnand %p627_p5, %p925_p11 }
 0x138   : > { %p633_p3 = por %p632_p1, %p631_p0 }
 0x139   : > { %p629_p9 = pneg %p628_p8 }
 0x13a   : > { %p635_p12 = por %p634_p6, %p633_p3 }
 0x13c   : > { %p636_p13 = pnand %p635_p12, %p629_p9 }
 0x13e   : > { %639 = shalt.err (!%p636_p13)
}
 0x13f   : > { %535 = dma.vmem_to_hbm [thread:$0]  (%p925_p11), %s871_s27, 512, %s869_s30, %s397_s10  }
 0x140 PF: > { %s423_s22 = sand.u32 1, %s666_s6   ;;  %p926_p7 = scmp.ne.s32.totalorder %s919_s19, 0 }
 0x141   : > { %p927_p10 = scmp.ge.s32.totalorder %s678_s9, 2  ;;  %s424_s23 = scalar_lea.sflag [#allocation4], %s423_s22 }
 0x143   : > { %p542_p2 = pnand %p927_p10, %p926_p7 }
 0x145   : > { %661 = dma.done.wait (!%p542_p2), %s424_s23, 512  }
 0x146   : > { %663 = vsyncadd (!%p542_p2), %s424_s23, 4294966784  ;;  %p14_p4 = scmp.ge.s32.totalorder %s720_s12, 4   ;;  %s928_s6 = smov %s670_s7 }
 0x147   : > { %s929_s7 = smov %s674_s8  ;;  %s930_s8 = smov %s732_s15 }
 0x148   : > { %s931_s9 = smov %s720_s12  ;;  %16 = sbr.rel (!%p14_p4) target bundleno = 5 (0x5), region = 69 }
 0x14f   :  { %429 = vsyncpa [#allocation3], 1 }
 0x150   :  { %431 = vsyncpa [#allocation3 + $0x1], 1 }
 0x151   :  { %432 = vsyncpa [#allocation4], 1 }
 0x152   :  { %434 = vsyncpa [#allocation4 + $0x1], 1 }

</bundles_post_ra>
